<compile_context>
chip_gen: v7x
topology: tpu7x:2x2x1
jax: 0.10.0
libtpu: 0.0.40
codegen_flags: <defaults>
</compile_context>

<pallas_src>
import jax
import jax.numpy as jnp
from jax.experimental import pallas as pl
from jax.experimental.pallas import tpu as pltpu


_TARGET_BLOCK_BYTES = 2 * 1024 * 1024   # ~2 MiB output blocks (near HBM roofline)
_VMEM_LIMIT_BYTES = 32 * 1024 * 1024    # safe on v5e/v6e (128 MiB) and v7x (64 MiB)


# ---------------------------------------------------------------------------
# Kernels
# ---------------------------------------------------------------------------

def _pairwise_diff_flat_kernel(min_ref, sub_ref, o_ref):
    # min_ref: (TI, TJ*D)  rows of xyz tiled TJ times along lanes (minuend)
    # sub_ref: (1,  TJ*D)  lane-flattened xyz columns for this j-tile (subtrahend)
    # o_ref:   (TI, TJ*D)  lane-dense output block
    o_ref[...] = (min_ref[...] - sub_ref[...]).astype(o_ref.dtype)


def _pairwise_diff_3d_kernel(xi_ref, xall_ref, o_ref):
    # xi_ref:   (TI, D) minuend rows
    # xall_ref: (N, D)  full xyz (subtrahend), resident across the grid
    # o_ref:    (TI, N, D)
    xi = xi_ref[...]
    xall = xall_ref[...]
    o_ref[...] = (xi[:, None, :] - xall[None, :, :]).astype(o_ref.dtype)


# ---------------------------------------------------------------------------
# Tile selection helpers
# ---------------------------------------------------------------------------

def _divisors(n):
    return [d for d in range(1, n + 1) if n % d == 0]


def _pick_flat_tiles(n, d, itemsize):
    """Pick (TI, TJ) for the lane-dense (N, N*D) formulation, or None."""
    cands = [t for t in _divisors(n) if (t * d) % 128 == 0]
    if not cands:
        return None
    wide = [t for t in cands if t * d >= 256]
    tj = min(wide) if wide else max(cands)          # keep the pre-tiled minuend small
    row_cands = [t for t in _divisors(n) if t % 8 == 0] or [n]
    fitting = [t for t in row_cands if t * tj * d * itemsize <= _TARGET_BLOCK_BYTES]
    ti = max(fitting) if fitting else min(row_cands)
    return ti, tj


def _pick_row_tile(n, d, itemsize):
    """Row tile for the 3-D fallback (block = (TI, N, D))."""
    row_cands = [t for t in _divisors(n) if t % 8 == 0] or [n]
    fitting = [t for t in row_cands if t * n * d * itemsize <= _TARGET_BLOCK_BYTES]
    return max(fitting) if fitting else min(row_cands)


# ---------------------------------------------------------------------------
# Wrapper
# ---------------------------------------------------------------------------

def positional_encoder(xyz: jax.Array, *, min_pallas_bytes: int = 1 << 20) -> jax.Array:
    """Pairwise differences: (N, D) -> (N, N, D)."""
    n, d = xyz.shape
    itemsize = jnp.dtype(xyz.dtype).itemsize
    out_bytes = n * n * d * itemsize

    # Tiny problems: grid-step + launch overhead dwarfs the work -> plain XLA.
    if out_bytes < min_pallas_bytes or n < 8:
        return xyz[:, None, :] - xyz[None, :, :]

    cost = pl.CostEstimate(
        flops=n * n * d,
        transcendentals=0,
        bytes_accessed=out_bytes + n * d * itemsize,
    )

    flat_tiles = _pick_flat_tiles(n, d, itemsize)
    if flat_tiles is not None:
        ti, tj = flat_tiles
        lane = tj * d
        x_rep = jnp.tile(xyz, (1, tj))      # (N, TJ*D): minuend lane pattern (small)
        x_flat = xyz.reshape(1, n * d)      # (1, N*D): subtrahend, lane-flattened
        out2d = pl.pallas_call(
            _pairwise_diff_flat_kernel,
            out_shape=jax.ShapeDtypeStruct((n, n * d), xyz.dtype),
            grid_spec=pltpu.PrefetchScalarGridSpec(
                num_scalar_prefetch=0,
                grid=(n // ti, n // tj),
                in_specs=[
                    # re-DMA'd only when the row-tile index i changes (j is inner)
                    pl.BlockSpec((ti, lane), lambda i, j: (i, 0)),
                    pl.BlockSpec((1, lane), lambda i, j: (0, j)),
                ],
                out_specs=pl.BlockSpec((ti, lane), lambda i, j: (i, j)),
            ),
            compiler_params=pltpu.CompilerParams(
                dimension_semantics=("parallel", "parallel"),
                vmem_limit_bytes=_VMEM_LIMIT_BYTES,
            ),
            cost_estimate=cost,
        )(x_rep, x_flat)
        return out2d.reshape(n, n, d)

    # Fallback: N*D has no 128-aligned column tiling -> 3-D blocks covering the
    # full (N, D) minor dims (always satisfies the (8,128) block constraint).
    ti = _pick_row_tile(n, d, itemsize)
    return pl.pallas_call(
        _pairwise_diff_3d_kernel,
        out_shape=jax.ShapeDtypeStruct((n, n, d), xyz.dtype),
        grid_spec=pltpu.PrefetchScalarGridSpec(
            num_scalar_prefetch=0,
            grid=(n // ti,),
            in_specs=[
                pl.BlockSpec((ti, d), lambda i: (i, 0)),
                pl.BlockSpec((n, d), lambda i: (0, 0)),   # resident subtrahend
            ],
            out_specs=pl.BlockSpec((ti, n, d), lambda i: (i, 0, 0)),
        ),
        compiler_params=pltpu.CompilerParams(
            dimension_semantics=("parallel",),
            vmem_limit_bytes=_VMEM_LIMIT_BYTES,
        ),
        cost_estimate=cost,
    )(xyz, xyz)


# ---------------------------------------------------------------------------
# Demo / self-check
# ---------------------------------------------------------------------------

if __name__ == "__main__":
    key = jax.random.PRNGKey(0)

    def check(n, d, **kw):
        xyz = jax.random.normal(key, (n, d), dtype=jnp.float32)
        out = jax.block_until_ready(positional_encoder(xyz, **kw))
        ref = xyz[:, None, :] - xyz[None, :, :]
        assert out.shape == (n, n, d)
        assert jnp.allclose(out, ref, atol=1e-6, rtol=1e-6)

    # 1) Tiny case (output << 1 MiB): wrapper takes the plain-JAX path.
    check(8, 32)
    # 2) Main Pallas path: lane-dense (N, N*D) tiling.
    check(128, 32)
    # 3) Pallas 3-D fallback path (N*D not 128-aligned), forced past the size cutoff.
    check(64, 3, min_pallas_bytes=0)

    print("KERNEL_OK")
</pallas_src>

<mosaic_0001>
module attributes {stable_mosaic.version = 11 : i64} {
  func.func @_pairwise_diff_flat_kernel(%arg0: i32, %arg1: i32, %arg2: memref<128x256xf32, #tpu.memory_space<vmem>>, %arg3: memref<1x256xf32, #tpu.memory_space<vmem>>, %arg4: memref<128x256xf32, #tpu.memory_space<vmem>>) attributes {dimension_semantics = [#tpu.dimension_semantics<parallel>, #tpu.dimension_semantics<parallel>], iteration_bounds = array<i64: 1, 16>, scalar_prefetch = 0 : i64, scratch_operands = 0 : i64, tpu.core_type = #tpu.core_type<tc>, window_params = [{transform_indices = @transform_0, window_bounds = array<i64: 128, 256>}, {transform_indices = @transform_1, window_bounds = array<i64: 1, 256>}, {transform_indices = @transform_2, window_bounds = array<i64: 128, 256>}]} {
    %c0 = arith.constant 0 : index
    %c0_0 = arith.constant 0 : index
    %0 = vector.load %arg2[%c0, %c0_0] : memref<128x256xf32, #tpu.memory_space<vmem>>, vector<128x256xf32>
    %c0_1 = arith.constant 0 : index
    %c0_2 = arith.constant 0 : index
    %1 = vector.load %arg3[%c0_1, %c0_2] : memref<1x256xf32, #tpu.memory_space<vmem>>, vector<1x256xf32>
    %2 = vector.broadcast %1 : vector<1x256xf32> to vector<128x256xf32>
    %3 = arith.subf %0, %2 : vector<128x256xf32>
    %c0_3 = arith.constant 0 : index
    %c0_4 = arith.constant 0 : index
    %4 = vector.load %arg4[%c0_3, %c0_4] : memref<128x256xf32, #tpu.memory_space<vmem>>, vector<128x256xf32>
    tpu.vector_store %arg4[%c0_3, %c0_4], %3 {strides = array<i32>} : memref<128x256xf32, #tpu.memory_space<vmem>>, vector<128x256xf32>,
    return
  }
  func.func @transform_0(%arg0: i32, %arg1: i32) -> (i32, i32) {
    %c0_i32 = arith.constant 0 : i32
    %c0_i32_0 = arith.constant 0 : i32
    return %arg0, %c0_i32 : i32, i32
  }
  func.func @transform_1(%arg0: i32, %arg1: i32) -> (i32, i32) {
    %c0_i32 = arith.constant 0 : i32
    %c0_i32_0 = arith.constant 0 : i32
    return %c0_i32, %arg1 : i32, i32
  }
  func.func @transform_2(%arg0: i32, %arg1: i32) -> (i32, i32) {
    %c0_i32 = arith.constant 0 : i32
    return %arg0, %arg1 : i32, i32
  }
}

</mosaic_0001>

<bundles_post_ra>
// kernel: tpu_custom_call.1
= control target key start
LH: loop header
LB: loop body
LE: loop exit
PB: predicated region body
PF: predicated region fallthrough
CT: control target
= control target key end

     0   :  { %7 = vsyncpa [#allocation3], 0  ;;  %s981_s0 = inlined_call_operand.hbm [shape: f32[128,256], index: 0, kind: input, shape index: {}]   ;;  %s982_s1 = inlined_call_operand.hbm [shape: f32[1,4096], index: 1, kind: input, shape index: {}]   ;;  %s983_s2 = inlined_call_operand.hbm [shape: f32[128,4096], index: 2, kind: output, shape index: {}]  }
   0x1   :  { %8 = vsyncpa [#allocation6], 0 }
   0x2   :  { %10 = vsyncpa [#allocation6 + $0x1], 0 }
   0x3   :  { %11 = vsyncpa [#allocation4], 0 }
   0x4   :  { %13 = vsyncpa [#allocation4 + $0x1], 0  ;;  %s691_s9 = smov 0   ;;  %s693_s10 = smov 0  }
   0x5   :  { %s695_s11 = smov 0   ;;  %s697_s12 = smov 0  }
   0x6   :  { %s699_s13 = smov 0   ;;  %s701_s14 = smov 0  }
   0x7 LB: > { %s425_s15 = sadd.s32 4294967295, %s666_s14   ;;  %s426_s16 = sadd.s32 4294967294, %s666_s14   ;;  %s666_s14 = sphi %s701_s14, %s19_s14   ;;  %s662_s13 = sphi %s699_s13, %s1006_s13   ;;  %s658_s12 = sphi %s697_s12, %s1005_s12   ;;  %s654_s11 = sphi %s695_s11, %s1004_s11   ;;  %s650_s10 = sphi %s693_s10, %s1003_s10   ;;  %s646_s9 = sphi %s691_s9, %s1002_s9  }
   0x8   : > { %p77_p0 = scmp.ne.s32.totalorder %s650_s10, %s646_s9  ;;  %p725_p1 = scmp.eq.s32.totalorder %s425_s15, 0 }
   0x9   : > { %p729_p2 = scmp.eq.s32.totalorder %s425_s15, 15  ;;  %p109_p3 = scmp.eq.s32.totalorder %s426_s16, 15 }
   0xa   : > { %s988_s17 = scalar_select %p725_p1, 1, 0 }
   0xb   : > { %s989_s18 = scalar_select %p729_p2, 1, 0 }
   0xc   : > { %p735_p4 = por %p725_p1, %p77_p0  ;;  %p427_p5 = scmp.ge.s32.totalorder %s666_s14, 1 }
   0xd   : > { %p740_p6 = por %p109_p3, %p77_p0  ;;  %p116_p7 = scmp.lt.s32.totalorder %s666_s14, 17 }
   0xe   : > { %s990_s19 = scalar_select %p735_p4, 1, 0 }
   0xf   : > { %s991_s20 = scalar_select %p740_p6, 1, 0 }
  0x10   : > { %p745_p8 = pnand %p427_p5, %p116_p7  ;;  %s668_s22 = smov [#allocation2]  }
  0x11   : > { %s132_s23 = sshll.u32 %s668_s22, 4  ;;  %s28_s25 = sadd.s32 1, %s662_s13  ;;  %s133_s23 = int_to_ptr.vmem [resolvable:$true] %s132_s23 }
  0x12   : > { %s992_s21 = scalar_select %p745_p8, 1, 0 }
  0x13   : > { %p452_p9 = pneg %p745_p8  ;;  %s522_s28 = scalar_lea.hbm %s981_s0, 4096 }
  0x14   : > { %p523_p11 = scmp.ne.s32.totalorder %s981_s0, %s522_s28  ;;  %p529_p3 = scmp.lt.u32.totalorder %s522_s28, %s981_s0 }
  0x15   : > { %p753_p10 = pnand %p452_p9, %p725_p1 }
  0x17   : > { %p524_p12 = pneg %p753_p10 }
  0x19   : > { %p525_p13 = pnand %p524_p12, %p523_p11 }
  0x1b   : > { %p526_p0 = pneg %p525_p13 }
  0x1d   : > { %p531_p5 = pnand %p529_p3, %p526_p0 }
  0x1f   : > { %534 = shalt.err (!%p531_p5)
}
  0x20   : > { %s535_s5 = scalar_lea.vmem %s133_s23, 4096  ;;  %p543_p4 = scmp.lt.s32.totalorder %s133_s23, %s133_s23 }
  0x21   : > { %p536_p7 = scmp.ne.s32.totalorder %s133_s23, %s535_s5  ;;  %p544_p1 = scmp.lt.s32.totalorder %s535_s5, %s535_s5 }
  0x23   : > { %p538_p9 = pnand %p536_p7, %p524_p12  ;;  %p545_p8 = por %p544_p1, %p543_p4 }
  0x25   : > { %p539_p6 = pneg %p538_p9 }
  0x27   : > { %p546_p2 = pnand %p545_p8, %p539_p6 }
  0x29   : > { %549 = shalt.err (!%p546_p2)
}
  0x2a   : > { %s669_s6 = smov 256   ;;  %s670_s7 = smov 16  }
  0x2b   : > { %455 = dma.hbm_to_vmem [thread:$0]  (!%p753_p10), %s981_s0, 4096, %s133_s23, [#allocation3], %s669_s6, %s669_s6, %s670_s7  }
  0x2c   : > { %p29_p1 = scmp.ge.s32.totalorder %s28_s25, 16  ;;  %s64_s16 = sadd.s32 1, %s654_s11 }
  0x2d   : > { %p71_p2 = scmp.ne.s32.totalorder %s654_s11, %s650_s10  ;;  %p72_p4 = scmp.eq.s32.totalorder %s666_s14, 0 }
  0x2e   : > { %s1008_s25 = smov (%p29_p1, %s28_s25), 0  ;;  %p995_p8 = scmp.ne.s32.totalorder %s989_s18, 0 }
  0x2f   : > { %p780_p6 = por %p72_p4, %p71_p2  ;;  %s61_s24 = ssub.s32 %s662_s13, %s1008_s25 }
  0x30   : > { %p786_p11 = por %p995_p8, %p71_p2  ;;  %p465_p12 = scmp.lt.s32.totalorder %s666_s14, 16 }
  0x31   : > { %p62_p10 = scmp.eq.s32.totalorder %s61_s24, 0  ;;  %s146_s23 = sand.u32 1, %s654_s11  }
  0x32   : > { %s430_s27 = sshll.u32 %s146_s23, 1  ;;  %s442_s29 = sshll.u32 %s662_s13, 5 }
  0x33   : > { %s795_s28 = scalar_select %p62_p10, %s654_s11, %s64_s16  }
  0x34   : > { %s801_s4 = scalar_lea.hbm %s982_s1, %s442_s29  ;;  %s150_s18 = scalar_lea.vmem [#allocation5], %s430_s27 }
  0x35   : > { %s158_s5 = sshll.u32 %s150_s18, 4  ;;  %p807_p13 = pnand %p465_p12, %p780_p6  ;;  %s803_s5 = int_to_ptr.vmem [resolvable:$true] %s158_s5 }
  0x36   : > { %s147_s7 = scalar_lea.sflag [#allocation6], %s146_s23  ;;  %s550_s8 = scalar_lea.hbm %s801_s4, 32 }
  0x37   : > { %p551_p0 = scmp.ne.s32.totalorder %s801_s4, %s550_s8  ;;  %p552_p3 = pneg %p807_p13 }
  0x38   : > { %s555_s24 = scalar_lea.hbm %s982_s1, 512  ;;  %p556_p9 = scmp.lt.u32.totalorder %s801_s4, %s982_s1 }
  0x39   : > { %p553_p5 = pnand %p552_p3, %p551_p0  ;;  %p557_p1 = scmp.lt.u32.totalorder %s555_s24, %s550_s8 }
  0x3a   : > { %p559_p4 = scmp.lt.u32.totalorder %s550_s8, %s801_s4 }
  0x3b   : > { %p554_p7 = pneg %p553_p5  ;;  %p558_p2 = por %p557_p1, %p556_p9 }
  0x3d   : > { %p560_p6 = por %p559_p4, %p558_p2 }
  0x3f   : > { %p561_p8 = pnand %p560_p6, %p554_p7 }
  0x41   : > { %564 = shalt.err (!%p561_p8)
}
  0x42   : > { %s565_s23 = scalar_lea.vmem %s803_s5, 32  ;;  %s671_s29 = smov [#allocation5]  }
  0x43   : > { %p566_p12 = scmp.ne.s32.totalorder %s803_s5, %s565_s23  ;;  %s570_s30 = sshll.u32 %s671_s29, 4  ;;  %s571_s30 = int_to_ptr.vmem [resolvable:$false] %s570_s30 }
  0x44   : > { %s572_s3 = scalar_lea.vmem %s571_s30, 64  ;;  %p573_p5 = scmp.lt.s32.totalorder %s803_s5, %s571_s30 }
  0x45   : > { %p568_p10 = pnand %p566_p12, %p552_p3  ;;  %p574_p9 = scmp.lt.s32.totalorder %s572_s3, %s565_s23 }
  0x47   : > { %p569_p0 = pneg %p568_p10  ;;  %p575_p1 = por %p574_p9, %p573_p5 }
  0x49   : > { %p576_p2 = pnand %p575_p1, %p569_p0 }
  0x4b   : > { %579 = shalt.err (!%p576_p2)
}
  0x4c   : > { %459 = dma.hbm_to_vmem [thread:$0]  (!%p807_p13), %s801_s4, 32, %s803_s5, %s147_s7  }
  0x4d   : > { %p998_p7 = scmp.ne.s32.totalorder %s992_s21, 0 }
  0x4e   : > { %p999_p3 = scmp.ne.s32.totalorder (!%p998_p7), %s988_s17, 0 }
  0x4f   : > { %167 = sbr.rel (%p998_p7) target bundleno = 132 (0x84), region = 28 }
  0x56   : > { %633 = dma.done.wait (%p999_p3), [#allocation3], 4096  }
  0x57   : > { %635 = vsyncadd (%p999_p3), [#allocation3], 4294963200  ;;  %s843_s18 = sand.u32 1, %s650_s10   ;;  %p1000_p4 = scmp.ne.s32.totalorder %s990_s19, 0 }
  0x58   : > { %s435_s8 = sshll.u32 %s843_s18, 1  ;;  %s174_s6 = scalar_lea.sflag [#allocation6], %s843_s18 }
  0x59   : > { %s177_s15 = scalar_lea.vmem [#allocation5], %s435_s8 }
  0x5a   : > { %637 = dma.done.wait (%p1000_p4), %s174_s6, 32  }
  0x5b   : > { %639 = vsyncadd (%p1000_p4), %s174_s6, 4294967264  ;;  %v236_v0 = vlaneseq  ;;  %s436_s17 = sshll.u32 %s843_s18, 8  ;;  %v202_v4 = vld [vmem:[#allocation2] sm:$0xff]  ;;  %v203_v6 = vld [vmem:[#allocation2 + $0x8] sm:$0xff]  ;;  %s443_s21 = sshll.u32 %s658_s12, 8 }
  0x5c   : > { %v234_v5 = vld [vmem:[%s177_s15] sm:$0x3]  ;;  %v204_v9 = vld [vmem:[#allocation2 + $0x10] sm:$0xff]  ;;  %v205_v10 = vld [vmem:[#allocation2 + $0x18] sm:$0xff]  ;;  %s864_s19 = scalar_lea.vmem [#allocation7], %s436_s17  ;;  %s911_s16 = scalar_lea.hbm %s983_s2, %s443_s21 }
  0x5d   : > { %v237_v1 = vshrl.u32 %v236_v0, 7  ;;  %v206_v11 = vld [vmem:[#allocation2 + $0x20] sm:$0xff]  ;;  %v207_v12 = vld [vmem:[#allocation2 + $0x28] sm:$0xff]  ;;  %v208_v13 = vld [vmem:[#allocation2 + $0x30] sm:$0xff]  ;;  %s327_s4 = sshll.u32 %s864_s19, 4  ;;  %s311_s12 = scalar_lea.sflag [#allocation4], %s843_s18  ;;  %s921_s4 = int_to_ptr.vmem [resolvable:$true] %s327_s4 }
  0x5e   : > { %v209_v14 = vld [vmem:[#allocation2 + $0x38] sm:$0xff]  ;;  %v210_v19 = vld [vmem:[#allocation2 + $0x40] sm:$0xff]  ;;  %v211_v20 = vld [vmem:[#allocation2 + $0x48] sm:$0xff]  ;;  %s580_s24 = scalar_lea.vmem %s921_s4, 4096  ;;  %s672_s22 = smov [#allocation7]  }
  0x5f   : > { %v238_v2 = vsub.s32 0, %v237_v1  ;;  %v242_v3 = vsub.s32 1, %v237_v1  ;;  %v212_v21 = vld [vmem:[#allocation2 + $0x50] sm:$0xff]  ;;  %v213_v26 = vld [vmem:[#allocation2 + $0x58] sm:$0xff]  ;;  %v214_v27 = vld [vmem:[#allocation2 + $0x60] sm:$0xff]  ;;  %p581_p13 = scmp.ne.s32.totalorder %s921_s4, %s580_s24  ;;  %s584_s27 = sshll.u32 %s672_s22, 4  ;;  %s585_s27 = int_to_ptr.vmem [resolvable:$false] %s584_s27 }
  0x60   : > { %v215_v28 = vld [vmem:[#allocation2 + $0x68] sm:$0xff]  ;;  %v216_v33 = vld [vmem:[#allocation2 + $0x70] sm:$0xff]  ;;  %v217_v34 = vld [vmem:[#allocation2 + $0x78] sm:$0xff]  ;;  %s586_s23 = scalar_lea.vmem %s585_s27, 8192  ;;  %p587_p12 = scmp.lt.s32.totalorder %s921_s4, %s585_s27 }
  0x61   : > { %v852_v7 = vrot.slane %v234_v5, %v238_v2  ;;  %v854_v8 = vrot.slane %v234_v5, %v242_v3  ;;  %v218_v35 = vld [vmem:[#allocation2 + $0x80] sm:$0xff]  ;;  %v219_v40 = vld [vmem:[#allocation2 + $0x88] sm:$0xff]  ;;  %v220_v41 = vld [vmem:[#allocation2 + $0x90] sm:$0xff]  ;;  %p582_p6 = pnand %p581_p13, %p786_p11  ;;  %p588_p10 = scmp.lt.s32.totalorder %s586_s23, %s580_s24 }
  0x62   : > { %v221_v42 = vld [vmem:[#allocation2 + $0x98] sm:$0xff]  ;;  %v222_v47 = vld [vmem:[#allocation2 + $0xa0] sm:$0xff]  ;;  %v223_v48 = vld [vmem:[#allocation2 + $0xa8] sm:$0xff] }
  0x63   : > { %v246_v15 = vsub.f32 %v202_v4, %v852_v7  ;;  %v247_v16 = vsub.f32 %v203_v6, %v854_v8  ;;  %v248_v17 = vsub.f32 %v204_v9, %v852_v7  ;;  %v249_v18 = vsub.f32 %v205_v10, %v854_v8  ;;  %v224_v49 = vld [vmem:[#allocation2 + $0xb0] sm:$0xff]  ;;  %v225_v53 = vld [vmem:[#allocation2 + $0xb8] sm:$0xff]  ;;  %v226_v54 = vld [vmem:[#allocation2 + $0xc0] sm:$0xff]  ;;  %p583_p8 = pneg %p582_p6  ;;  %p589_p0 = por %p588_p10, %p587_p12 }
  0x64   : > { %v250_v22 = vsub.f32 %v206_v11, %v852_v7  ;;  %v251_v23 = vsub.f32 %v207_v12, %v854_v8  ;;  %v252_v24 = vsub.f32 %v208_v13, %v852_v7  ;;  %v253_v25 = vsub.f32 %v209_v14, %v854_v8  ;;  %v227_v55 = vld [vmem:[#allocation2 + $0xc8] sm:$0xff]  ;;  %v228_v59 = vld [vmem:[#allocation2 + $0xd0] sm:$0xff]  ;;  %v229_v60 = vld [vmem:[#allocation2 + $0xd8] sm:$0xff] }
  0x65   : > { %278 = vst [vmem:[%s864_s19] sm:$0xff] %v246_v15  ;;  %279 = vst [vmem:[%s864_s19 + $0x8] sm:$0xff] %v247_v16  ;;  %v254_v29 = vsub.f32 %v210_v19, %v852_v7  ;;  %v255_v30 = vsub.f32 %v211_v20, %v854_v8  ;;  %v256_v31 = vsub.f32 %v212_v21, %v852_v7  ;;  %v230_v61 = vld [vmem:[#allocation2 + $0xe0] sm:$0xff]  ;;  %v231_v1 = vld [vmem:[#allocation2 + $0xe8] sm:$0xff]  ;;  %p590_p5 = pnand %p589_p0, %p583_p8 }
  0x66   : > { %280 = vst [vmem:[%s864_s19 + $0x10] sm:$0xff] %v248_v17  ;;  %281 = vst [vmem:[%s864_s19 + $0x18] sm:$0xff] %v249_v18  ;;  %v257_v32 = vsub.f32 %v213_v26, %v854_v8  ;;  %v258_v36 = vsub.f32 %v214_v27, %v852_v7  ;;  %v259_v37 = vsub.f32 %v215_v28, %v854_v8  ;;  %v232_v2 = vld [vmem:[#allocation2 + $0xf0] sm:$0xff]  ;;  %v233_v3 = vld [vmem:[#allocation2 + $0xf8] sm:$0xff] }
  0x67   : > { %282 = vst [vmem:[%s864_s19 + $0x20] sm:$0xff] %v250_v22  ;;  %283 = vst [vmem:[%s864_s19 + $0x28] sm:$0xff] %v251_v23  ;;  %v260_v38 = vsub.f32 %v216_v33, %v852_v7  ;;  %v261_v39 = vsub.f32 %v217_v34, %v854_v8  ;;  %v262_v43 = vsub.f32 %v218_v35, %v852_v7 }
  0x68   : > { %284 = vst [vmem:[%s864_s19 + $0x30] sm:$0xff] %v252_v24  ;;  %285 = vst [vmem:[%s864_s19 + $0x38] sm:$0xff] %v253_v25  ;;  %v263_v44 = vsub.f32 %v219_v40, %v854_v8  ;;  %v264_v45 = vsub.f32 %v220_v41, %v852_v7  ;;  %v265_v46 = vsub.f32 %v221_v42, %v854_v8 }
  0x69   : > { %286 = vst [vmem:[%s864_s19 + $0x40] sm:$0xff] %v254_v29  ;;  %287 = vst [vmem:[%s864_s19 + $0x48] sm:$0xff] %v255_v30  ;;  %v266_v50 = vsub.f32 %v222_v47, %v852_v7  ;;  %v267_v51 = vsub.f32 %v223_v48, %v854_v8  ;;  %v268_v52 = vsub.f32 %v224_v49, %v852_v7 }
  0x6a   : > { %288 = vst [vmem:[%s864_s19 + $0x50] sm:$0xff] %v256_v31  ;;  %289 = vst [vmem:[%s864_s19 + $0x58] sm:$0xff] %v257_v32  ;;  %v269_v56 = vsub.f32 %v225_v53, %v854_v8  ;;  %v270_v57 = vsub.f32 %v226_v54, %v852_v7  ;;  %v271_v58 = vsub.f32 %v227_v55, %v854_v8 }
  0x6b   : > { %290 = vst [vmem:[%s864_s19 + $0x60] sm:$0xff] %v258_v36  ;;  %291 = vst [vmem:[%s864_s19 + $0x68] sm:$0xff] %v259_v37  ;;  %v272_v62 = vsub.f32 %v228_v59, %v852_v7  ;;  %v273_v63 = vsub.f32 %v229_v60, %v854_v8  ;;  %v274_v0 = vsub.f32 %v230_v61, %v852_v7 }
  0x6c   : > { %292 = vst [vmem:[%s864_s19 + $0x70] sm:$0xff] %v260_v38  ;;  %293 = vst [vmem:[%s864_s19 + $0x78] sm:$0xff] %v261_v39  ;;  %v275_v4 = vsub.f32 %v231_v1, %v854_v8  ;;  %v276_v5 = vsub.f32 %v232_v2, %v852_v7  ;;  %v277_v6 = vsub.f32 %v233_v3, %v854_v8 }
  0x6d   : > { %294 = vst [vmem:[%s864_s19 + $0x80] sm:$0xff] %v262_v43  ;;  %295 = vst [vmem:[%s864_s19 + $0x88] sm:$0xff] %v263_v44 }
  0x6e   : > { %296 = vst [vmem:[%s864_s19 + $0x90] sm:$0xff] %v264_v45  ;;  %297 = vst [vmem:[%s864_s19 + $0x98] sm:$0xff] %v265_v46 }
  0x6f   : > { %298 = vst [vmem:[%s864_s19 + $0xa0] sm:$0xff] %v266_v50  ;;  %299 = vst [vmem:[%s864_s19 + $0xa8] sm:$0xff] %v267_v51 }
  0x70   : > { %300 = vst [vmem:[%s864_s19 + $0xb0] sm:$0xff] %v268_v52  ;;  %301 = vst [vmem:[%s864_s19 + $0xb8] sm:$0xff] %v269_v56 }
  0x71   : > { %302 = vst [vmem:[%s864_s19 + $0xc0] sm:$0xff] %v270_v57  ;;  %303 = vst [vmem:[%s864_s19 + $0xc8] sm:$0xff] %v271_v58 }
  0x72   : > { %304 = vst [vmem:[%s864_s19 + $0xd0] sm:$0xff] %v272_v62  ;;  %305 = vst [vmem:[%s864_s19 + $0xd8] sm:$0xff] %v273_v63 }
  0x73   : > { %306 = vst [vmem:[%s864_s19 + $0xe0] sm:$0xff] %v274_v0  ;;  %307 = vst [vmem:[%s864_s19 + $0xe8] sm:$0xff] %v275_v4 }
  0x74   : > { %308 = vst [vmem:[%s864_s19 + $0xf0] sm:$0xff] %v276_v5  ;;  %309 = vst [vmem:[%s864_s19 + $0xf8] sm:$0xff] %v277_v6 }
  0x75   : > { %593 = shalt.err (!%p590_p5)
}
  0x76   : > { %s594_s29 = scalar_lea.hbm %s911_s16, 4096  ;;  %s598_s8 = scalar_lea.hbm %s983_s2, 65536 }
  0x77   : > { %p595_p9 = scmp.ne.s32.totalorder %s911_s16, %s594_s29  ;;  %p599_p7 = scmp.lt.u32.totalorder %s911_s16, %s983_s2 }
  0x78   : > { %p600_p3 = scmp.lt.u32.totalorder %s598_s8, %s594_s29  ;;  %p602_p13 = scmp.lt.u32.totalorder %s594_s29, %s911_s16 }
  0x79   : > { %p596_p1 = pnand %p595_p9, %p786_p11 }
  0x7a   : > { %p601_p4 = por %p600_p3, %p599_p7 }
  0x7b   : > { %p597_p2 = pneg %p596_p1 }
  0x7c   : > { %p603_p6 = por %p602_p13, %p601_p4 }
  0x7e   : > { %p604_p8 = pnand %p603_p6, %p597_p2 }
  0x80   : > { %607 = shalt.err (!%p604_p8)
}
  0x81   : > { %s673_s17 = smov 256   ;;  %s674_s19 = smov 4096  }
  0x82   : > { %s675_s21 = smov 16  }
  0x83   : > { %450 = dma.vmem_to_hbm [thread:$0]  (%p786_p11), %s921_s4, 4096, %s911_s16, %s311_s12, %s673_s17, %s674_s19, %s675_s21  }
  0x84 PF: > { %p467_p12 = scmp.ge.s32.totalorder %s666_s14, 2  ;;  %s342_s5 = sand.u32 1, %s646_s9  }
  0x85   : > { %p1001_p10 = scmp.ne.s32.totalorder %s991_s20, 0  ;;  %s343_s7 = scalar_lea.sflag [#allocation4], %s342_s5 }
  0x87   : > { %p461_p0 = pnand %p467_p12, %p1001_p10 }
  0x89   : > { %641 = dma.done.wait (!%p461_p0), %s343_s7, 4096  }
  0x8a   : > { %643 = vsyncadd (!%p461_p0), %s343_s7, 4294963200  ;;  %s19_s14 = sadd.s32 1, %s666_s14   ;;  %s1002_s9 = smov %s650_s10 }
  0x8b   : > { %p16_p5 = scmp.ge.s32.totalorder %s19_s14, 18   ;;  %s1003_s10 = smov %s654_s11 }
  0x8c   : > { %s1004_s11 = smov %s795_s28  ;;  %s1005_s12 = smov %s662_s13 }
  0x8d   : > { %s1006_s13 = smov %s1008_s25  ;;  %18 = sbr.rel (!%p16_p5) target bundleno = 7 (0x7), region = 79 }
  0x94   :  { %348 = vsyncpa [#allocation3], 1 }
  0x95   :  { %350 = vsyncpa [#allocation3 + $0x1], 1 }
  0x96   :  { %351 = vsyncpa [#allocation6], 1 }
  0x97   :  { %353 = vsyncpa [#allocation6 + $0x1], 1 }
  0x98   :  { %354 = vsyncpa [#allocation4], 1 }
  0x99   :  { %356 = vsyncpa [#allocation4 + $0x1], 1 }

</bundles_post_ra>
